<compile_context>
chip_gen: v7x
topology: tpu7x:2x2x1
jax: 0.10.0
libtpu: 0.0.40
codegen_flags: <defaults>
</compile_context>

<pallas_src>
import functools

import jax
import jax.numpy as jnp
from jax.experimental import pallas as pl
from jax.experimental.pallas import tpu as pltpu


def _round_up(x: int, m: int) -> int:
    return (x + m - 1) // m * m


def _apply_activation(x, activation: str):
    if activation == "tanh":
        return jnp.tanh(x)
    elif activation == "relu":
        return jnp.maximum(x, 0.0)
    elif activation == "sigmoid":
        return jax.nn.sigmoid(x)
    elif activation == "gelu":
        # torch.nn.GELU default is the exact erf form.  If profiling shows the
        # VALU slot saturating, approximate=True routes through the EUP.
        return jax.nn.gelu(x, approximate=False)
    elif activation == "lrelu":
        # torch.nn.LeakyReLU() default negative_slope = 0.01
        return jnp.where(x >= 0.0, x, 0.01 * x)
    else:
        raise ValueError(f"unknown activation: {activation}")


def _mlp_fused_kernel(*refs, num_layers: int, activation: str, compute_dtype):
    """Fused MLP tile: out = act(... act(act(x@W0+b0)@W1+b1) ...).

    Ref ordering: (x, W_0..W_{L-1}, b_0..b_{L-1}, out).  x/out are (tm, dim)
    batch tiles; weights/biases are full-array VMEM blocks resident across the
    whole grid.  The layer loop is unrolled at trace time so intermediates
    live in vregs/VMEM only.
    """
    x_ref = refs[0]
    w_refs = refs[1:1 + num_layers]
    b_refs = refs[1 + num_layers:1 + 2 * num_layers]
    o_ref = refs[1 + 2 * num_layers]

    # In-kernel cast of the f32 input tile to the matmul compute dtype (bf16).
    cur = x_ref[...].astype(compute_dtype)
    for i in range(num_layers):
        # MXU matmul with f32 accumulation; bias + activation in f32.
        acc = jnp.dot(cur, w_refs[i][...], preferred_element_type=jnp.float32)
        acc = acc + b_refs[i][...]          # b is (1, N) -> broadcasts over rows
        act = _apply_activation(acc, activation)
        if i < num_layers - 1:
            cur = act.astype(compute_dtype)
        else:
            o_ref[...] = act.astype(o_ref.dtype)


def _vmem_limit_bytes() -> int:
    """~75% of physical VMEM (96 MiB on v5e/v6e, 48 MiB on v7x)."""
    try:
        cap = pltpu.get_tpu_info().vmem_capacity_bytes
    except Exception:
        cap = 64 << 20  # conservative fallback (v7x-sized)
    return int(cap * 3 // 4)


def mlp_forward(x, params, activation="tanh", compute_dtype=jnp.bfloat16,
                block_m=512):
    """Run the whole MLP in one fused, batch-tiled Pallas call.

    x: (B, in_dim) float32; params: list of (W[in, out] bf16, b[out] f32).
    Returns (B, out_dim) float32.
    """
    num_layers = len(params)
    ws = [w.astype(compute_dtype) for (w, _) in params]
    bs = [b.reshape(1, -1).astype(jnp.float32) for (_, b) in params]

    B, in_dim = x.shape
    out_dim = ws[-1].shape[1]

    # Batch tile: multiple of 8 sublanes, clamped to the (padded) batch.
    tm = min(_round_up(max(block_m, 8), 8), _round_up(B, 8))
    Bp = _round_up(B, tm)
    if Bp != B:
        x = jnp.pad(x, ((0, Bp - B), (0, 0)))
    grid = (Bp // tm,)

    kernel = functools.partial(
        _mlp_fused_kernel,
        num_layers=num_layers,
        activation=activation,
        compute_dtype=compute_dtype,
    )

    # x / out stream per batch tile; weights & biases use a constant
    # index_map so they are fetched once and stay resident in VMEM.
    x_spec = pl.BlockSpec((tm, in_dim), lambda i: (i, 0))
    w_specs = [pl.BlockSpec(w.shape, lambda i: (0, 0)) for w in ws]
    b_specs = [pl.BlockSpec(b.shape, lambda i: (0, 0)) for b in bs]
    out_spec = pl.BlockSpec((tm, out_dim), lambda i: (i, 0))

    out = pl.pallas_call(
        kernel,
        out_shape=jax.ShapeDtypeStruct((Bp, out_dim), jnp.float32),
        grid=grid,
        in_specs=[x_spec] + w_specs + b_specs,
        out_specs=out_spec,
        compiler_params=pltpu.CompilerParams(
            dimension_semantics=("parallel",),
            vmem_limit_bytes=_vmem_limit_bytes(),
        ),
    )(x, *ws, *bs)

    if Bp != B:
        out = out[:B]
    return out


def init_mlp_params(key, in_dim, h_dims, param_dtype=jnp.bfloat16):
    """nn.Linear-style init (U[-1/sqrt(fan_in), +]); weights stored (in, out).

    Weights are cast to `param_dtype` (bf16) ONCE here so every forward pass
    moves half the HBM bytes; biases stay f32 (added to the f32 accumulator).
    """
    params = []
    d_in = in_dim
    for h_dim in h_dims:
        key, kw, kb = jax.random.split(key, 3)
        bound = 1.0 / jnp.sqrt(jnp.float32(d_in))
        w = jax.random.uniform(kw, (d_in, h_dim), jnp.float32, -bound, bound)
        b = jax.random.uniform(kb, (h_dim,), jnp.float32, -bound, bound)
        params.append((w.astype(param_dtype), b.astype(jnp.float32)))
        d_in = h_dim
    return params


def _reference_mlp(x, params, activation="tanh", compute_dtype=jnp.bfloat16):
    """Plain-JAX reference mirroring the kernel's bf16-in / f32-accumulate math."""
    cur = x.astype(compute_dtype)
    act = None
    for w, b in params:
        acc = jnp.dot(
            cur.astype(jnp.float32),
            w.astype(jnp.float32),
            preferred_element_type=jnp.float32,
        ) + b.astype(jnp.float32)
        act = _apply_activation(acc, activation)
        cur = act.astype(compute_dtype)
    return act  # final layer's f32 activation


if __name__ == "__main__":
    key = jax.random.PRNGKey(0)
    k_x, k_p = jax.random.split(key)

    batch, in_dim = 16, 32
    h_dims = [128, 128]
    activation = "tanh"

    x = jax.random.normal(k_x, (batch, in_dim), jnp.float32)
    params = init_mlp_params(k_p, in_dim, h_dims)

    # block_m=8 at these tiny shapes -> 2 grid steps, exercising the
    # resident-weight / streamed-batch pipeline (real workloads use the
    # default block_m=512).
    out = mlp_forward(x, params, activation=activation, block_m=8)
    out = jax.block_until_ready(out)

    ref = _reference_mlp(x, params, activation=activation)

    assert out.shape == (batch, h_dims[-1])
    assert out.dtype == jnp.float32
    # bf16 inputs/weights -> allow small tolerance (tanh output is bounded).
    assert jnp.allclose(out, ref, atol=1e-2, rtol=1e-2), (
        float(jnp.max(jnp.abs(out - ref)))
    )

    print("KERNEL_OK")
</pallas_src>

<mosaic_0001>
module attributes {stable_mosaic.version = 11 : i64} {
  func.func @_mlp_fused_kernel(%arg0: i32, %arg1: memref<8x32xf32, #tpu.memory_space<vmem>>, %arg2: memref<32x128xbf16, #tpu.memory_space<vmem>>, %arg3: memref<128x128xbf16, #tpu.memory_space<vmem>>, %arg4: memref<1x128xf32, #tpu.memory_space<vmem>>, %arg5: memref<1x128xf32, #tpu.memory_space<vmem>>, %arg6: memref<8x128xf32, #tpu.memory_space<vmem>>) attributes {dimension_semantics = [#tpu.dimension_semantics<parallel>], iteration_bounds = array<i64: 2>, scalar_prefetch = 0 : i64, scratch_operands = 0 : i64, tpu.core_type = #tpu.core_type<tc>, window_params = [{transform_indices = @transform_0, window_bounds = array<i64: 8, 32>}, {pipeline_mode = #tpu.pipeline_mode<synchronous>, transform_indices = @transform_1, window_bounds = array<i64: 32, 128>}, {pipeline_mode = #tpu.pipeline_mode<synchronous>, transform_indices = @transform_2, window_bounds = array<i64: 128, 128>}, {pipeline_mode = #tpu.pipeline_mode<synchronous>, transform_indices = @transform_3, window_bounds = array<i64: 1, 128>}, {pipeline_mode = #tpu.pipeline_mode<synchronous>, transform_indices = @transform_4, window_bounds = array<i64: 1, 128>}, {transform_indices = @transform_5, window_bounds = array<i64: 8, 128>}]} {
    %c0 = arith.constant 0 : index
    %c0_0 = arith.constant 0 : index
    %0 = vector.load %arg1[%c0, %c0_0] : memref<8x32xf32, #tpu.memory_space<vmem>>, vector<8x32xf32>
    %1 = arith.truncf %0 : vector<8x32xf32> to vector<8x32xbf16>
    %c0_1 = arith.constant 0 : index
    %c0_2 = arith.constant 0 : index
    %2 = vector.load %arg2[%c0_1, %c0_2] : memref<32x128xbf16, #tpu.memory_space<vmem>>, vector<32x128xbf16>
    %cst = arith.constant dense<0.000000e+00> : vector<8x128xf32>
    %3 = tpu.matmul %1, %2, %cst {dimension_numbers = #tpu.dot_dimension_numbers<[1], [0], [0], [1], [0, 0, 1, 1], [], []>} : vector<8x32xbf16>, vector<32x128xbf16>, vector<8x128xf32> -> vector<8x128xf32>
    %c0_3 = arith.constant 0 : index
    %c0_4 = arith.constant 0 : index
    %4 = vector.load %arg4[%c0_3, %c0_4] : memref<1x128xf32, #tpu.memory_space<vmem>>, vector<1x128xf32>
    %5 = vector.broadcast %4 : vector<1x128xf32> to vector<8x128xf32>
    %6 = arith.addf %3, %5 : vector<8x128xf32>
    %7 = math.tanh %6 : vector<8x128xf32>
    %8 = arith.truncf %7 : vector<8x128xf32> to vector<8x128xbf16>
    %c0_5 = arith.constant 0 : index
    %c0_6 = arith.constant 0 : index
    %9 = vector.load %arg3[%c0_5, %c0_6] : memref<128x128xbf16, #tpu.memory_space<vmem>>, vector<128x128xbf16>
    %cst_7 = arith.constant dense<0.000000e+00> : vector<8x128xf32>
    %10 = tpu.matmul %8, %9, %cst_7 {dimension_numbers = #tpu.dot_dimension_numbers<[1], [0], [0], [1], [0, 0, 1, 1], [], []>} : vector<8x128xbf16>, vector<128x128xbf16>, vector<8x128xf32> -> vector<8x128xf32>
    %c0_8 = arith.constant 0 : index
    %c0_9 = arith.constant 0 : index
    %11 = vector.load %arg5[%c0_8, %c0_9] : memref<1x128xf32, #tpu.memory_space<vmem>>, vector<1x128xf32>
    %12 = vector.broadcast %11 : vector<1x128xf32> to vector<8x128xf32>
    %13 = arith.addf %10, %12 : vector<8x128xf32>
    %14 = math.tanh %13 : vector<8x128xf32>
    %c0_10 = arith.constant 0 : index
    %c0_11 = arith.constant 0 : index
    %15 = vector.load %arg6[%c0_10, %c0_11] : memref<8x128xf32, #tpu.memory_space<vmem>>, vector<8x128xf32>
    tpu.vector_store %arg6[%c0_10, %c0_11], %14 {strides = array<i32>} : memref<8x128xf32, #tpu.memory_space<vmem>>, vector<8x128xf32>,
    return
  }
  func.func @transform_0(%arg0: i32) -> (i32, i32) {
    %c0_i32 = arith.constant 0 : i32
    %c0_i32_0 = arith.constant 0 : i32
    return %arg0, %c0_i32 : i32, i32
  }
  func.func @transform_1(%arg0: i32) -> (i32, i32) {
    %c0_i32 = arith.constant 0 : i32
    %c0_i32_0 = arith.constant 0 : i32
    %c0_i32_1 = arith.constant 0 : i32
    return %c0_i32, %c0_i32_0 : i32, i32
  }
  func.func @transform_2(%arg0: i32) -> (i32, i32) {
    %c0_i32 = arith.constant 0 : i32
    %c0_i32_0 = arith.constant 0 : i32
    %c0_i32_1 = arith.constant 0 : i32
    return %c0_i32, %c0_i32_0 : i32, i32
  }
  func.func @transform_3(%arg0: i32) -> (i32, i32) {
    %c0_i32 = arith.constant 0 : i32
    %c0_i32_0 = arith.constant 0 : i32
    %c0_i32_1 = arith.constant 0 : i32
    return %c0_i32, %c0_i32_0 : i32, i32
  }
  func.func @transform_4(%arg0: i32) -> (i32, i32) {
    %c0_i32 = arith.constant 0 : i32
    %c0_i32_0 = arith.constant 0 : i32
    %c0_i32_1 = arith.constant 0 : i32
    return %c0_i32, %c0_i32_0 : i32, i32
  }
  func.func @transform_5(%arg0: i32) -> (i32, i32) {
    %c0_i32 = arith.constant 0 : i32
    %c0_i32_0 = arith.constant 0 : i32
    return %arg0, %c0_i32 : i32, i32
  }
}

</mosaic_0001>

<bundles_post_ra>
// kernel: tpu_custom_call.1
= control target key start
LH: loop header
LB: loop body
LE: loop exit
PB: predicated region body
PF: predicated region fallthrough
CT: control target
= control target key end

     0   :  { %10 = vsyncpa [#allocation3], 0  ;;  %s1146_s0 = inlined_call_operand.hbm [shape: f32[16,32], index: 0, kind: input, shape index: {}]   ;;  %s1147_s1 = inlined_call_operand.hbm [shape: bf16[32,128], index: 1, kind: input, shape index: {}]   ;;  %s1148_s2 = inlined_call_operand.hbm [shape: bf16[128,128], index: 2, kind: input, shape index: {}]   ;;  %s1149_s3 = inlined_call_operand.vmem [shape: f32[1,128], index: 3, kind: input, shape index: {}]   ;;  %s1150_s4 = inlined_call_operand.vmem [shape: f32[1,128], index: 4, kind: input, shape index: {}]   ;;  %s1151_s5 = inlined_call_operand.hbm [shape: f32[16,128], index: 5, kind: output, shape index: {}]  }
   0x1   :  { %12 = vsyncpa [#allocation3 + $0x1], 0 }
   0x2   :  { %13 = vsyncpa [#allocation6], 0 }
   0x3   :  { %14 = vsyncpa [#allocation4], 0 }
   0x4   :  { %16 = vsyncpa [#allocation4 + $0x1], 0  ;;  %s907_s18 = smov 0   ;;  %s909_s19 = smov 0  }
   0x5   :  { %s911_s20 = smov 0   ;;  %s913_s21 = smov 0  }
   0x6 LB: > { %s928_s22 = sadd.s32 4294967295, %s867_s21   ;;  %s557_s23 = sadd.s32 4294967294, %s867_s21   ;;  %s867_s21 = sphi %s913_s21, %s1171_s21   ;;  %s863_s20 = sphi %s911_s20, %s1170_s20   ;;  %s859_s19 = sphi %s909_s19, %s1169_s19   ;;  %s855_s18 = sphi %s907_s18, %s1168_s18  }
   0x7   : > { %p42_p0 = scmp.ne.s32.totalorder %s859_s19, %s855_s18  ;;  %p1152_p1 = scmp.eq.s32.totalorder %s928_s22, 0 }
   0x8   : > { %p156_p3 = scmp.eq.s32.totalorder %s557_s23, 1  ;;  %p558_p5 = scmp.ge.s32.totalorder %s867_s21, 1 }
   0x9   : > { %p937_p4 = por %p1152_p1, %p42_p0  ;;  %p163_p7 = scmp.lt.s32.totalorder %s867_s21, 3 }
   0xa   : > { %p942_p6 = por %p156_p3, %p42_p0  ;;  %s869_s27 = smov [#allocation5]  }
   0xb   : > { %s1155_s24 = scalar_select %p937_p4, 1, 0 }
   0xc   : > { %s1156_s25 = scalar_select %p942_p6, 1, 0 }
   0xd   : > { %p947_p8 = pnand %p558_p5, %p163_p7  ;;  %s175_s28 = sshll.u32 %s869_s27, 4  ;;  %s951_s28 = int_to_ptr.vmem [resolvable:$true] %s175_s28 }
   0xe   : > { %s870_s30 = smov [#allocation7]   ;;  %s711_s9 = scalar_lea.hbm %s1147_s1, 256 }
   0xf   : > { %p638_p9 = pneg %p947_p8  ;;  %s188_s6 = sshll.u32 %s870_s30, 4  ;;  %s962_s6 = int_to_ptr.vmem [resolvable:$true] %s188_s6 }
  0x10   : > { %p712_p12 = scmp.ne.s32.totalorder %s1147_s1, %s711_s9  ;;  %p718_p5 = scmp.lt.u32.totalorder %s711_s9, %s1147_s1 }
  0x11   : > { %p958_p11 = pnand %p638_p9, %p1152_p1 }
  0x13   : > { %p713_p13 = pneg %p958_p11 }
  0x15   : > { %p714_p0 = pnand %p713_p13, %p712_p12 }
  0x17   : > { %p715_p3 = pneg %p714_p0 }
  0x19   : > { %p720_p7 = pnand %p718_p5, %p715_p3 }
  0x1b   : > { %723 = shalt.err (!%p720_p7)
}
  0x1c   : > { %s724_s14 = scalar_lea.vmem %s951_s28, 256  ;;  %p732_p2 = scmp.lt.s32.totalorder %s951_s28, %s951_s28 }
  0x1d   : > { %p725_p9 = scmp.ne.s32.totalorder %s951_s28, %s724_s14  ;;  %p733_p12 = scmp.lt.s32.totalorder %s724_s14, %s724_s14 }
  0x1f   : > { %p727_p10 = pnand %p725_p9, %p713_p13  ;;  %p734_p0 = por %p733_p12, %p732_p2 }
  0x21   : > { %p728_p1 = pneg %p727_p10 }
  0x23   : > { %p735_p6 = pnand %p734_p0, %p728_p1 }
  0x25   : > { %738 = shalt.err (!%p735_p6)
}
  0x26   : > { %s871_s15 = smov 64   ;;  %s872_s16 = smov 4  }
  0x27   : > { %641 = dma.hbm_to_vmem [thread:$0]  (!%p958_p11), %s1147_s1, 256, %s951_s28, [#allocation6], %s871_s15, %s871_s15, %s872_s16  }
  0x28   : > { %s739_s7 = scalar_lea.hbm %s1148_s2, 1024 }
  0x29   : > { %p740_p2 = scmp.ne.s32.totalorder %s1148_s2, %s739_s7  ;;  %p746_p10 = scmp.lt.u32.totalorder %s739_s7, %s1148_s2 }
  0x2b   : > { %p742_p1 = pnand %p740_p2, %p713_p13 }
  0x2d   : > { %p743_p6 = pneg %p742_p1 }
  0x2f   : > { %p748_p3 = pnand %p746_p10, %p743_p6 }
  0x31   : > { %751 = shalt.err (!%p748_p3)
}
  0x32   : > { %s752_s28 = scalar_lea.vmem %s962_s6, 1024  ;;  %p760_p12 = scmp.lt.s32.totalorder %s962_s6, %s962_s6 }
  0x33   : > { %p753_p5 = scmp.ne.s32.totalorder %s962_s6, %s752_s28  ;;  %p761_p0 = scmp.lt.s32.totalorder %s752_s28, %s752_s28 }
  0x35   : > { %p755_p7 = pnand %p753_p5, %p713_p13  ;;  %p762_p2 = por %p761_p0, %p760_p12 }
  0x37   : > { %p756_p9 = pneg %p755_p7 }
  0x39   : > { %p763_p1 = pnand %p762_p2, %p756_p9 }
  0x3b   : > { %766 = shalt.err (!%p763_p1)
}
  0x3c   : > { %644 = dma.hbm_to_vmem [thread:$0]  (!%p958_p11), %s1148_s2, 1024, %s962_s6, [#allocation6], %s871_s15, %s871_s15, %s872_s16  }
  0x3d   : > { %s1017_s14 = sadd.s32 1, %s867_s21   ;;  %s29_s29 = sadd.s32 1, %s863_s20 }
  0x3e   : > { %s26_s17 = ssub.s32 %s867_s21, %s1017_s14  ;;  %p36_p13 = scmp.ne.s32.totalorder %s863_s20, %s859_s19 }
  0x3f   : > { %p27_p6 = scmp.eq.s32.totalorder %s26_s17, 0  ;;  %p37_p10 = scmp.eq.s32.totalorder %s867_s21, 0 }
  0x40   : > { %p1159_p3 = scmp.eq.s32.totalorder %s928_s22, 1  ;;  %p655_p7 = scmp.lt.s32.totalorder %s867_s21, 2 }
  0x41   : > { %s1033_s27 = scalar_select %p27_p6, %s863_s20, %s29_s29  }
  0x42   : > { %p1027_p5 = por %p1159_p3, %p36_p13  ;;  %p38_p9 = por %p37_p10, %p36_p13 }
  0x43   : > { %s208_s30 = sand.u32 1, %s863_s20   ;;  %s563_s6 = sshll.u32 %s867_s21, 7 }
  0x44   : > { %s1160_s23 = scalar_select %p1027_p5, 1, 0 }
  0x45   : > { %s562_s7 = sshll.u32 %s208_s30, 3  ;;  %s1040_s8 = scalar_lea.hbm %s1146_s0, %s563_s6 }
  0x46   : > { %s212_s9 = scalar_lea.vmem [#allocation2], %s562_s7  ;;  %p1044_p11 = pnand %p655_p7, %p38_p9 }
  0x47   : > { %s219_s10 = sshll.u32 %s212_s9, 4  ;;  %s209_s28 = scalar_lea.sflag [#allocation3], %s208_s30  ;;  %s1042_s10 = int_to_ptr.vmem [resolvable:$true] %s219_s10 }
  0x48   : > { %s767_s12 = scalar_lea.hbm %s1040_s8, 128  ;;  %p769_p0 = pneg %p1044_p11 }
  0x49   : > { %p768_p12 = scmp.ne.s32.totalorder %s1040_s8, %s767_s12  ;;  %s772_s17 = scalar_lea.hbm %s1146_s0, 256 }
  0x4a   : > { %p773_p13 = scmp.lt.u32.totalorder %s1040_s8, %s1146_s0  ;;  %p774_p6 = scmp.lt.u32.totalorder %s772_s17, %s767_s12 }
  0x4b   : > { %p770_p2 = pnand %p769_p0, %p768_p12  ;;  %p776_p3 = scmp.lt.u32.totalorder %s767_s12, %s1040_s8 }
  0x4c   : > { %p775_p10 = por %p774_p6, %p773_p13 }
  0x4d   : > { %p771_p1 = pneg %p770_p2 }
  0x4e   : > { %p777_p7 = por %p776_p3, %p775_p10 }
  0x50   : > { %p778_p9 = pnand %p777_p7, %p771_p1 }
  0x52   : > { %781 = shalt.err (!%p778_p9)
}
  0x53   : > { %s782_s30 = scalar_lea.vmem %s1042_s10, 128  ;;  %s873_s15 = smov [#allocation2]  }
  0x54   : > { %p783_p12 = scmp.ne.s32.totalorder %s1042_s10, %s782_s30  ;;  %s787_s16 = sshll.u32 %s873_s15, 4  ;;  %s788_s16 = int_to_ptr.vmem [resolvable:$false] %s787_s16 }
  0x55   : > { %s789_s9 = scalar_lea.vmem %s788_s16, 256  ;;  %p790_p4 = scmp.lt.s32.totalorder %s1042_s10, %s788_s16 }
  0x56   : > { %p785_p2 = pnand %p783_p12, %p769_p0  ;;  %p791_p13 = scmp.lt.s32.totalorder %s789_s9, %s782_s30 }
  0x58   : > { %p786_p5 = pneg %p785_p2  ;;  %p792_p6 = por %p791_p13, %p790_p4 }
  0x5a   : > { %p793_p10 = pnand %p792_p6, %p786_p5 }
  0x5c   : > { %796 = shalt.err (!%p793_p10)
}
  0x5d   : > { %648 = dma.hbm_to_vmem [thread:$0]  (!%p1044_p11), %s1040_s8, 128, %s1042_s10, %s209_s28  }
  0x5e   : > { %228 = sbr.rel (%p947_p8) target bundleno = 581 (0x245), region = 40  ;;  %s1076_s12 = sand.u32 (!%p947_p8), 1, %s859_s19  }
  0x5f   : > { %s565_s13 = sshll.u32 (!%p947_p8), %s1076_s12, 3  ;;  %s231_s29 = scalar_lea.sflag (!%p947_p8), [#allocation3], %s1076_s12 }
  0x60   : > { %s234_s17 = scalar_lea.vmem (!%p947_p8), [#allocation2], %s565_s13  ;;  %p1162_p4 = scmp.ne.s32.totalorder (!%p947_p8), %s1155_s24, 0 }
  0x65   : > { %842 = dma.done.wait (%p1162_p4), %s231_s29, 128  }
  0x66   : > { %844 = vsyncadd (%p1162_p4), %s231_s29, 4294967168  ;;  %p1163_p5 = scmp.eq.s32.totalorder %s928_s22, 0 }
  0x68   : > { %846 = dma.done.wait (%p1163_p5), [#allocation6], 1280   ;;  %p1164_p8 = pmov %p1163_p5 }
  0x69   : > { %v874_v0 = vmov 0.0   ;;  %vm875_vm0 = vmmov 0   ;;  %v697_v1 = vld [vmem:[#allocation5] sm:$0xff]   ;;  %v698_v2 = vld [vmem:[#allocation5 + $0x8] sm:$0xff]   ;;  %v270_v3 = vld [vmem:[%s234_s17] sm:$0xff]  ;;  %vm295_vm1 = vcmask 261120  }
  0x6a   : > { %848 = vsyncadd (%p1164_p8), [#allocation6], 4294966016  ;;  %598 = vmatprep.subr.bf16.mxu0 %v874_v0  ;;  %602 = vmatprep.mubr.msk.bf16.mxu0 %vm875_vm0, %v874_v0  ;;  %v699_v4 = vld [vmem:[#allocation7] sm:$0xff]   ;;  %v271_v5 = vpack.c.bf16 %v270_v3, %v270_v3  ;;  %v700_v6 = vld [vmem:[#allocation7 + $0x8] sm:$0xff]   ;;  %s583_s11 = sshll.u32 %s928_s22, 7  ;;  %s268_s28 = scalar_lea.vmem [#allocation8], %s565_s13 }
  0x6b   : > { %606 = vmatprep.subr.bf16.mxu1 %v874_v0  ;;  %622 = vmatprep.mubr.msk.bf16.mxu1 %vm875_vm0, %v874_v0  ;;  %v701_v7 = vld [vmem:[#allocation7 + $0x10] sm:$0xff]   ;;  %v702_v8 = vld [vmem:[#allocation7 + $0x18] sm:$0xff]   ;;  %v703_v9 = vld [vmem:[#allocation7 + $0x20] sm:$0xff]   ;;  %s468_s7 = sshll.u32 %s268_s28, 4  ;;  %s1102_s15 = scalar_lea.hbm %s1151_s5, %s583_s11  ;;  %s1104_s7 = int_to_ptr.vmem [resolvable:$true] %s468_s7 }
  0x6c   : > { %599 = vmatpush3.bf16.msra.mxu0 %v697_v1  ;;  %607 = vmatpush3.bf16.msra.mxu1 %v699_v4  ;;  %v704_v10 = vld [vmem:[#allocation7 + $0x28] sm:$0xff]   ;;  %v705_v11 = vld [vmem:[#allocation7 + $0x30] sm:$0xff]   ;;  %v706_v12 = vld [vmem:[#allocation7 + $0x38] sm:$0xff]   ;;  %s455_s16 = scalar_lea.sflag [#allocation4], %s1076_s12  ;;  %s797_s9 = scalar_lea.vmem %s1104_s7, 128 }
  0x6d   : > { %600 = vmatprep.subr.bf16.mxu0 %v874_v0  ;;  %608 = vmatprep.subr.bf16.mxu1 %v874_v0  ;;  %v569_v13 = vld [vmem:[%s1149_s3] ss:$0 sm:$0xff]  ;;  %p798_p11 = scmp.ne.s32.totalorder %s1104_s7, %s797_s9  ;;  %p1165_p0 = scmp.ne.s32.totalorder %s1160_s23, 0 }
  0x6e   : > { %v573_v21 = vld [vmem:[%s1150_s4] ss:$0 sm:$0xff]  ;;  %s876_s22 = smov [#allocation8]  }
  0x6f   : > { %p799_p1 = pnand %p798_p11, %p1165_p0  ;;  %s801_s13 = sshll.u32 %s876_s22, 4  ;;  %s802_s13 = int_to_ptr.vmem [resolvable:$false] %s801_s13 }
  0x70   : > { %601 = vmatpush3.bf16.msra.mxu0 %v698_v2  ;;  %609 = vmatpush3.bf16.msra.mxu1 %v700_v6  ;;  %s803_s29 = scalar_lea.vmem %s802_s13, 256  ;;  %p804_p7 = scmp.lt.s32.totalorder %s1104_s7, %s802_s13 }
  0x71   : > { %610 = vmatprep.subr.bf16.mxu1 %v874_v0  ;;  %p800_p3 = pneg %p799_p1  ;;  %p805_p9 = scmp.lt.s32.totalorder %s803_s29, %s797_s9 }
  0x73   : > { %603 = vmatmul.mubr.msk.bf16.vlgmr.msra.gmra.mrb[0].mxu0 %vm295_vm1, %v271_v5  ;;  %p806_p12 = por %p805_p9, %p804_p7 }
  0x74   : > { %611 = vmatpush3.bf16.msra.mxu1 %v701_v7 }
  0x75   : > { %612 = vmatprep.subr.bf16.mxu1 %v874_v0  ;;  %p807_p2 = pnand %p806_p12, %p800_p3 }
  0x78   : > { %613 = vmatpush3.bf16.msra.mxu1 %v702_v8 }
  0x79   : > { %614 = vmatprep.subr.bf16.mxu1 %v874_v0 }
  0x7c   : > { %615 = vmatpush3.bf16.msra.mxu1 %v703_v9 }
  0x7d   : > { %616 = vmatprep.subr.bf16.mxu1 %v874_v0 }
  0x80   : > { %617 = vmatpush3.bf16.msra.mxu1 %v704_v10 }
  0x81   : > { %618 = vmatprep.subr.bf16.mxu1 %v874_v0 }
  0x84   : > { %619 = vmatpush3.bf16.msra.mxu1 %v705_v11 }
  0x85   : > { %620 = vmatprep.subr.bf16.mxu1 %v874_v0 }
  0x88   : > { %621 = vmatpush3.bf16.msra.mxu1 %v706_v12 }
 0x146   : > { %v333_v14 = vpop.f32.mrb[0].mxu0 }
 0x147   : > { %v334_v15 = vadd.f32 %v569_v13, %v333_v14  ;;  %v604_v16 = vpop.f32.mrb[1].mxu0 }
 0x148   : > { %v336_v17 = vpop.f32.mrb[2].mxu0 }
 0x149   : > { %707 = vtanh.f32 %v334_v15  ;;  %v605_v18 = vpop.f32.mrb[3].mxu0 }
 0x153   : > { %v708_v19 = vpop.eup %707 }
 0x154   : > { %v340_v20 = vpack.c.bf16 %v708_v19, %v708_v19 }
 0x156   : > { %623 = vmatmul.mubr.bf16.vlgmr.msra.gmra.mrb[0].mxu1 %v340_v20 }
 0x229   : > { %v446_v22 = vpop.f32.mrb[0].mxu1 }
 0x22a   : > { %v447_v23 = vadd.f32 %v573_v21, %v446_v22  ;;  %v624_v24 = vpop.f32.mrb[1].mxu1 }
 0x22b   : > { %v449_v25 = vpop.f32.mrb[2].mxu1 }
 0x22c   : > { %709 = vtanh.f32 %v447_v23  ;;  %v625_v26 = vpop.f32.mrb[3].mxu1 }
 0x236   : > { %v710_v27 = vpop.eup %709 }
 0x237   : > { %453 = vst [vmem:[%s268_s28] sm:$0xff] %v710_v27 }
 0x238   : > { %810 = shalt.err (!%p807_p2)
}
 0x239   : > { %s811_s12 = scalar_lea.hbm %s1102_s15, 128  ;;  %s815_s26 = scalar_lea.hbm %s1151_s5, 256 }
 0x23a   : > { %p812_p13 = scmp.ne.s32.totalorder %s1102_s15, %s811_s12  ;;  %p816_p4 = scmp.lt.u32.totalorder %s1102_s15, %s1151_s5 }
 0x23b   : > { %p817_p5 = scmp.lt.u32.totalorder %s815_s26, %s811_s12  ;;  %p819_p11 = scmp.lt.u32.totalorder %s811_s12, %s1102_s15 }
 0x23c   : > { %p813_p6 = pnand %p812_p13, %p1165_p0 }
 0x23d   : > { %p818_p8 = por %p817_p5, %p816_p4 }
 0x23e   : > { %p814_p10 = pneg %p813_p6 }
 0x23f   : > { %p820_p1 = por %p819_p11, %p818_p8 }
 0x241   : > { %p821_p3 = pnand %p820_p1, %p814_p10 }
 0x243   : > { %824 = shalt.err (!%p821_p3)
}
 0x244   : > { %636 = dma.vmem_to_hbm [thread:$0]  (%p1165_p0), %s1104_s7, 128, %s1102_s15, %s455_s16  }
 0x245 PF: > { %s480_s11 = sand.u32 1, %s855_s18   ;;  %p1166_p7 = scmp.ne.s32.totalorder %s1156_s25, 0 }
 0x246   : > { %p1167_p9 = scmp.ge.s32.totalorder %s867_s21, 2  ;;  %s481_s28 = scalar_lea.sflag [#allocation4], %s480_s11 }
 0x248   : > { %p650_p12 = pnand %p1167_p9, %p1166_p7 }
 0x24a   : > { %850 = dma.done.wait (!%p650_p12), %s481_s28, 128  }
 0x24b   : > { %852 = vsyncadd (!%p650_p12), %s481_s28, 4294967168  ;;  %p19_p2 = scmp.ge.s32.totalorder %s1017_s14, 4   ;;  %s1168_s18 = smov %s859_s19 }
 0x24c   : > { %s1169_s19 = smov %s863_s20  ;;  %s1170_s20 = smov %s1033_s27 }
 0x24d   : > { %s1171_s21 = smov %s1017_s14  ;;  %21 = sbr.rel (!%p19_p2) target bundleno = 6 (0x6), region = 93 }
 0x254   :  { %486 = vsyncpa [#allocation3], 1 }
 0x255   :  { %488 = vsyncpa [#allocation3 + $0x1], 1 }
 0x256   :  { %489 = vsyncpa [#allocation6], 1 }
 0x257   :  { %490 = vsyncpa [#allocation4], 1 }
 0x258   :  { %492 = vsyncpa [#allocation4 + $0x1], 1 }

</bundles_post_ra>
